<compile_context>
chip_gen: v7x
topology: tpu7x:2x2x1
jax: 0.10.0
libtpu: 0.0.40
codegen_flags: <defaults>
</compile_context>

<pallas_src>
import functools
import math

import jax
import jax.numpy as jnp
from jax import lax
from jax.experimental import pallas as pl
from jax.experimental.pallas import tpu as pltpu

_LANE = 128
_SUBLANE = 8
_VMEM_LIMIT = 48 * 1024 * 1024   # safe under v7x's 64 MiB; bump toward ~96 MiB on v5e/v6e
_NEG_INF = -1e30                 # finite mask value: avoids inf-inf -> nan in online softmax

# Set to jnp.bfloat16 on v6e/v7x production shapes (f32 accumulation is kept);
# demo uses f32 so the correctness check vs the f32 reference is exact-ish.
_COMPUTE_DTYPE = None


def _round_up(x, m):
    return (x + m - 1) // m * m


def _pad2d(a, rows, cols):
    return jnp.pad(a, ((0, rows - a.shape[0]), (0, cols - a.shape[1])))


# ---------------------------------------------------------------------------
# Kernel 1: tiled linear  y = x @ W + b   (W stored as (in, out))
# ---------------------------------------------------------------------------
def _linear_kernel(x_ref, w_ref, b_ref, o_ref, acc_ref):
    k = pl.program_id(2)

    @pl.when(k == 0)
    def _():
        acc_ref[...] = jnp.zeros_like(acc_ref)

    acc_ref[...] += jnp.dot(x_ref[...], w_ref[...],
                            preferred_element_type=jnp.float32)

    @pl.when(k == pl.num_programs(2) - 1)
    def _():
        o_ref[...] = (acc_ref[...] + b_ref[...]).astype(o_ref.dtype)


def linear_pallas(x, w_t, b, *, tile_m=256, tile_n=512, tile_k=512,
                  compute_dtype=_COMPUTE_DTYPE):
    *lead, K = x.shape
    N = w_t.shape[1]
    M = math.prod(lead) if lead else 1
    out_dtype = x.dtype

    x2 = x.reshape(M, K)
    if compute_dtype is not None:
        x2 = x2.astype(compute_dtype)
        w_t = w_t.astype(compute_dtype)

    # Clamp tiles to the 128-rounded dims, then pad dims to a tile multiple
    # (replaces the gcd scheme that could silently collapse tiles to 128).
    tm = min(tile_m, _round_up(M, _SUBLANE))
    tn = min(tile_n, _round_up(N, _LANE))
    tk = min(tile_k, _round_up(K, _LANE))
    Mp, Np, Kp = _round_up(M, tm), _round_up(N, tn), _round_up(K, tk)

    x_p = _pad2d(x2, Mp, Kp)
    w_p = _pad2d(w_t, Kp, Np)
    b_p = _pad2d(b.reshape(1, N).astype(jnp.float32), 1, Np)

    gi, gj, gk = Mp // tm, Np // tn, Kp // tk
    itemsize = 2 if compute_dtype == jnp.bfloat16 else 4
    cost = pl.CostEstimate(
        flops=2 * M * K * N, transcendentals=0,
        bytes_accessed=int(itemsize * (gj * Mp * Kp + gi * Kp * Np)
                           + 4 * (Np + Mp * Np)))

    out = pl.pallas_call(
        _linear_kernel,
        out_shape=jax.ShapeDtypeStruct((Mp, Np), out_dtype),
        grid_spec=pltpu.PrefetchScalarGridSpec(
            num_scalar_prefetch=0,
            grid=(gi, gj, gk),
            in_specs=[
                pl.BlockSpec((tm, tk), lambda i, j, k: (i, k)),
                pl.BlockSpec((tk, tn), lambda i, j, k: (k, j)),
                pl.BlockSpec((1, tn), lambda i, j, k: (0, j)),
            ],
            out_specs=pl.BlockSpec((tm, tn), lambda i, j, k: (i, j)),
            scratch_shapes=[pltpu.VMEM((tm, tn), jnp.float32)],
        ),
        compiler_params=pltpu.CompilerParams(
            dimension_semantics=("parallel", "parallel", "arbitrary"),
            vmem_limit_bytes=_VMEM_LIMIT),
        cost_estimate=cost,
    )(x_p, w_p, b_p)

    return out[:M, :N].reshape(*lead, N)


# ---------------------------------------------------------------------------
# Kernel 2: fused FeedForward  GELU(x @ W1 + b1) @ W2 + b2, diff dim streamed
# ---------------------------------------------------------------------------
def _ffn_kernel(x_ref, w1_ref, b1_ref, w2_ref, b2_ref, o_ref, acc_ref):
    k = pl.program_id(1)

    @pl.when(k == 0)
    def _():
        acc_ref[...] = jnp.zeros_like(acc_ref)

    x = x_ref[...]
    w2 = w2_ref[...]
    # exact erf GELU (== nn.GELU default); tanh-approx would free VALU slots
    # on v6e/v7x at the cost of matching nn.GELU numerics.
    h = jnp.dot(x, w1_ref[...], preferred_element_type=jnp.float32) + b1_ref[...]
    h = 0.5 * h * (1.0 + lax.erf(h * (1.0 / math.sqrt(2.0))))
    acc_ref[...] += jnp.dot(h.astype(w2.dtype), w2,
                            preferred_element_type=jnp.float32)

    @pl.when(k == pl.num_programs(1) - 1)
    def _():
        o_ref[...] = (acc_ref[...] + b2_ref[...]).astype(o_ref.dtype)


def ffn_pallas(x, w1_t, b1, w2_t, b2, *, tile_m=256, tile_k=512,
               compute_dtype=_COMPUTE_DTYPE):
    # TODO(synk): for d_model >= 4096 on v7x, add an output-D grid axis (or
    # drop tm/tk) so the (tm, Dp) x/acc/out blocks fit the 64 MiB VMEM budget.
    *lead, D = x.shape
    F = w1_t.shape[1]
    M = math.prod(lead) if lead else 1
    out_dtype = x.dtype

    x2 = x.reshape(M, D)
    if compute_dtype is not None:
        x2 = x2.astype(compute_dtype)
        w1_t = w1_t.astype(compute_dtype)
        w2_t = w2_t.astype(compute_dtype)

    Dp = _round_up(D, _LANE)
    tm = min(tile_m, _round_up(M, _SUBLANE))
    tk = min(tile_k, _round_up(F, _LANE))
    Mp, Fp = _round_up(M, tm), _round_up(F, tk)

    x_p = _pad2d(x2, Mp, Dp)
    w1_p = _pad2d(w1_t, Dp, Fp)
    b1_p = _pad2d(b1.reshape(1, F).astype(jnp.float32), 1, Fp)
    w2_p = _pad2d(w2_t, Fp, Dp)
    b2_p = _pad2d(b2.reshape(1, D).astype(jnp.float32), 1, Dp)

    gi, gk = Mp // tm, Fp // tk
    itemsize = 2 if compute_dtype == jnp.bfloat16 else 4
    cost = pl.CostEstimate(
        flops=4 * M * D * F, transcendentals=M * F,
        bytes_accessed=int(itemsize * (gk * Mp * Dp + 2 * gi * Dp * Fp)
                           + 4 * (Fp + Dp + Mp * Dp)))

    out = pl.pallas_call(
        _ffn_kernel,
        out_shape=jax.ShapeDtypeStruct((Mp, Dp), out_dtype),
        grid_spec=pltpu.PrefetchScalarGridSpec(
            num_scalar_prefetch=0,
            grid=(gi, gk),
            in_specs=[
                pl.BlockSpec((tm, Dp), lambda i, k: (i, 0)),   # x rows, resident over k
                pl.BlockSpec((Dp, tk), lambda i, k: (0, k)),   # W1 column tile
                pl.BlockSpec((1, tk), lambda i, k: (0, k)),    # b1 tile
                pl.BlockSpec((tk, Dp), lambda i, k: (k, 0)),   # W2 row tile
                pl.BlockSpec((1, Dp), lambda i, k: (0, 0)),    # b2 (used at finalize)
            ],
            out_specs=pl.BlockSpec((tm, Dp), lambda i, k: (i, 0)),
            scratch_shapes=[pltpu.VMEM((tm, Dp), jnp.float32)],
        ),
        compiler_params=pltpu.CompilerParams(
            dimension_semantics=("parallel", "arbitrary"),
            vmem_limit_bytes=_VMEM_LIMIT),
        cost_estimate=cost,
    )(x_p, w1_p, b1_p, w2_p, b2_p)

    return out[:M, :D].reshape(*lead, D)


# ---------------------------------------------------------------------------
# Kernel 3: flash-style attention over all (batch*head) pairs in one call
#           grid = (B*H, q_tiles, kv_tiles), kv streamed with online softmax
# ---------------------------------------------------------------------------
def _attention_kernel(q_ref, k_ref, v_ref, o_ref, m_sc, l_sc, acc_sc, *,
                      scale, kv_len, causal, tq, tkv):
    kv = pl.program_id(2)

    @pl.when(kv == 0)
    def _():
        m_sc[...] = jnp.full_like(m_sc, _NEG_INF)
        l_sc[...] = jnp.zeros_like(l_sc)
        acc_sc[...] = jnp.zeros_like(acc_sc)

    q = q_ref[0]                       # (tq, Dhp)
    k = k_ref[0]                       # (tkv, Dhp)
    v = v_ref[0]
    s = jnp.dot(q, k.T, preferred_element_type=jnp.float32) * scale   # (tq, tkv)

    k0 = kv * tkv
    col = k0 + lax.broadcasted_iota(jnp.int32, s.shape, 1)
    valid = col < kv_len
    if causal:
        q0 = pl.program_id(1) * tq
        row = q0 + lax.broadcasted_iota(jnp.int32, s.shape, 0)
        valid = jnp.logical_and(valid, col <= row)
    s = jnp.where(valid, s, _NEG_INF)

    m_prev = m_sc[...]
    m_new = jnp.maximum(m_prev, jnp.max(s, axis=-1, keepdims=True))
    alpha = jnp.exp(m_prev - m_new)
    p = jnp.exp(s - m_new)
    l_sc[...] = alpha * l_sc[...] + jnp.sum(p, axis=-1, keepdims=True)
    acc_sc[...] = alpha * acc_sc[...] + jnp.dot(p.astype(v.dtype), v,
                                                preferred_element_type=jnp.float32)
    m_sc[...] = m_new

    @pl.when(kv == pl.num_programs(2) - 1)
    def _():
        inv = pl.reciprocal(l_sc[...], approx=True)   # EUP, not VALU division
        o_ref[0] = (acc_sc[...] * inv).astype(o_ref.dtype)


def attention_pallas(q, k, v, *, scale, causal, tile_q=256, tile_kv=512):
    """q: (BH, Sq, Dh); k, v: (BH, Skv, Dh) -> (BH, Sq, Dh)."""
    BH, Sq, Dh = q.shape
    Skv = k.shape[1]
    Dhp = _round_up(Dh, _LANE)
    tq = min(tile_q, _round_up(Sq, _SUBLANE))
    tkv = min(tile_kv, _round_up(Skv, _LANE))      # key axis lane-dense
    Sqp, Skp = _round_up(Sq, tq), _round_up(Skv, tkv)

    q_p = jnp.pad(q, ((0, 0), (0, Sqp - Sq), (0, Dhp - Dh)))
    k_p = jnp.pad(k, ((0, 0), (0, Skp - Skv), (0, Dhp - Dh)))
    v_p = jnp.pad(v, ((0, 0), (0, Skp - Skv), (0, Dhp - Dh)))

    kern = functools.partial(_attention_kernel, scale=scale, kv_len=Skv,
                             causal=causal, tq=tq, tkv=tkv)
    out = pl.pallas_call(
        kern,
        out_shape=jax.ShapeDtypeStruct((BH, Sqp, Dhp), q.dtype),
        grid_spec=pltpu.PrefetchScalarGridSpec(
            num_scalar_prefetch=0,
            grid=(BH, Sqp // tq, Skp // tkv),
            in_specs=[
                pl.BlockSpec((1, tq, Dhp), lambda b, qi, ki: (b, qi, 0)),
                pl.BlockSpec((1, tkv, Dhp), lambda b, qi, ki: (b, ki, 0)),
                pl.BlockSpec((1, tkv, Dhp), lambda b, qi, ki: (b, ki, 0)),
            ],
            out_specs=pl.BlockSpec((1, tq, Dhp), lambda b, qi, ki: (b, qi, 0)),
            scratch_shapes=[pltpu.VMEM((tq, 1), jnp.float32),    # running max
                            pltpu.VMEM((tq, 1), jnp.float32),    # running denom
                            pltpu.VMEM((tq, Dhp), jnp.float32)], # running numerator
        ),
        compiler_params=pltpu.CompilerParams(
            dimension_semantics=("parallel", "parallel", "arbitrary"),
            vmem_limit_bytes=_VMEM_LIMIT),
    )(q_p, k_p, v_p)

    return out[:, :Sq, :Dh]


# ---------------------------------------------------------------------------
# Kernel 4: fused residual-add + LayerNorm over the last dim
# ---------------------------------------------------------------------------
def _add_layernorm_kernel(x_ref, y_ref, g_ref, b_ref, o_ref, *, d, dp, eps):
    x = x_ref[...].astype(jnp.float32) + y_ref[...].astype(jnp.float32)
    if d == dp:                                   # lane-aligned: no masking needed
        mean = jnp.mean(x, axis=-1, keepdims=True)
        cent = x - mean
        var = jnp.mean(cent * cent, axis=-1, keepdims=True)
    else:
        mask = lax.broadcasted_iota(jnp.int32, x.shape, 1) < d
        xm = jnp.where(mask, x, 0.0)
        mean = jnp.sum(xm, axis=-1, keepdims=True) * (1.0 / d)
        cent = jnp.where(mask, x - mean, 0.0)
        var = jnp.sum(cent * cent, axis=-1, keepdims=True) * (1.0 / d)
    y = cent * lax.rsqrt(var + eps) * g_ref[...] + b_ref[...]
    o_ref[...] = y.astype(o_ref.dtype)


def add_layernorm_pallas(x, y, gamma, beta, *, eps=1e-5, tile_m=256):
    """LayerNorm(x + y) with the residual add fused into the kernel."""
    *lead, D = x.shape
    M = math.prod(lead) if lead else 1
    Dp = _round_up(D, _LANE)
    tm = min(tile_m, _round_up(M, _SUBLANE))
    Mp = _round_up(M, tm)

    x_p = _pad2d(x.reshape(M, D), Mp, Dp)
    y_p = _pad2d(y.reshape(M, D), Mp, Dp)
    g_p = _pad2d(gamma.reshape(1, D).astype(jnp.float32), 1, Dp)
    b_p = _pad2d(beta.reshape(1, D).astype(jnp.float32), 1, Dp)

    kern = functools.partial(_add_layernorm_kernel, d=D, dp=Dp, eps=eps)
    out = pl.pallas_call(
        kern,
        out_shape=jax.ShapeDtypeStruct((Mp, Dp), x.dtype),
        grid_spec=pltpu.PrefetchScalarGridSpec(
            num_scalar_prefetch=0,
            grid=(Mp // tm,),
            in_specs=[
                pl.BlockSpec((tm, Dp), lambda i: (i, 0)),
                pl.BlockSpec((tm, Dp), lambda i: (i, 0)),
                pl.BlockSpec((1, Dp), lambda i: (0, 0)),
                pl.BlockSpec((1, Dp), lambda i: (0, 0)),
            ],
            out_specs=pl.BlockSpec((tm, Dp), lambda i: (i, 0)),
        ),
        compiler_params=pltpu.CompilerParams(
            dimension_semantics=("parallel",),
            vmem_limit_bytes=_VMEM_LIMIT),
    )(x_p, y_p, g_p, b_p)

    return out[:M, :D].reshape(*lead, D)


# ---------------------------------------------------------------------------
# Pure-JAX references (same orchestration, used for numeric verification)
# ---------------------------------------------------------------------------
def linear_ref(x, w_t, b, **_):
    return x @ w_t + b


def ffn_ref(x, w1_t, b1, w2_t, b2, **_):
    h = x @ w1_t + b1
    h = 0.5 * h * (1.0 + lax.erf(h * (1.0 / math.sqrt(2.0))))
    return h @ w2_t + b2


def attention_ref(q, k, v, *, scale, causal, **_):
    s = jnp.einsum("bqd,bkd->bqk", q, k) * scale
    if causal:
        Sq, Sk = s.shape[-2], s.shape[-1]
        tri = jnp.tril(jnp.ones((Sq, Sk), dtype=bool))
        s = jnp.where(tri, s, -jnp.inf)
    p = jax.nn.softmax(s, axis=-1)
    return jnp.einsum("bqk,bkd->bqd", p, v)


def add_layernorm_ref(x, y, gamma, beta, *, eps=1e-5, **_):
    z = x + y
    mean = jnp.mean(z, axis=-1, keepdims=True)
    var = jnp.mean((z - mean) ** 2, axis=-1, keepdims=True)
    return (z - mean) * lax.rsqrt(var + eps) * gamma + beta


OPS_PALLAS = {"linear": linear_pallas, "ffn": ffn_pallas,
              "attention": attention_pallas, "add_layernorm": add_layernorm_pallas}
OPS_REF = {"linear": linear_ref, "ffn": ffn_ref,
           "attention": attention_ref, "add_layernorm": add_layernorm_ref}


# ---------------------------------------------------------------------------
# Model (mirrors the PyTorch Transformer module structure / semantics)
# ---------------------------------------------------------------------------
def get_positional_embedding(seq_length, d_model):
    pos = jnp.arange(seq_length, dtype=jnp.float32)[:, None]
    i = jnp.arange(d_model, dtype=jnp.float32)[None, :]
    angle = pos / jnp.power(10000.0, 2.0 * i / d_model)
    even = (jnp.arange(d_model)[None, :] % 2) == 0
    return jnp.where(even, jnp.sin(angle), jnp.cos(angle))


def _init_linear(key, fan_in, fan_out):
    kw, kb = jax.random.split(key)
    bound = 1.0 / math.sqrt(fan_in)
    return {"w": jax.random.uniform(kw, (fan_in, fan_out), jnp.float32, -bound, bound),
            "b": jax.random.uniform(kb, (fan_out,), jnp.float32, -bound, bound)}


def _init_layernorm(d):
    return {"g": jnp.ones((d,), jnp.float32), "b": jnp.zeros((d,), jnp.float32)}


def _init_ff(key, d_model):
    k1, k2 = jax.random.split(key)
    return {"p1": _init_linear(k1, d_model, 4 * d_model),
            "p2": _init_linear(k2, 4 * d_model, d_model)}


def _init_mha(key, d_model, num_heads):
    # Per-head q/k/v projections packed along the output dim (head order kept),
    # so one (d_model, d_model) matmul per stream replaces num_heads tiny ones.
    head_hid = d_model // num_heads
    keys = jax.random.split(key, 3 * num_heads + 1)
    bound = 1.0 / math.sqrt(d_model)

    def pack(offset):
        ws, bs = [], []
        for h in range(num_heads):
            kw, kb = jax.random.split(keys[3 * h + offset])
            ws.append(jax.random.uniform(kw, (d_model, head_hid), jnp.float32, -bound, bound))
            bs.append(jax.random.uniform(kb, (head_hid,), jnp.float32, -bound, bound))
        return jnp.concatenate(ws, axis=1), jnp.concatenate(bs, axis=0)

    wq, bq = pack(0)
    wk, bk = pack(1)
    wv, bv = pack(2)
    return {"wq": wq, "bq": bq, "wk": wk, "bk": bk, "wv": wv, "bv": bv,
            "proj": _init_linear(keys[-1], d_model, d_model)}


def _init_encoder_block(key, cfg):
    d, e, nh = cfg["d_model"], cfg["embedding_dim"], cfg["num_heads"]
    ks = jax.random.split(key, 5)
    return {"k_proj": _init_linear(ks[0], e, d),
            "q_proj": _init_linear(ks[1], e, d),
            "v_proj": _init_linear(ks[2], e, d),
            "mha": _init_mha(ks[3], d, nh),
            "ff": _init_ff(ks[4], d),
            "ln": _init_layernorm(d)}


def _init_decoder_block(key, cfg):
    d, e, nh = cfg["d_model"], cfg["embedding_dim"], cfg["num_heads"]
    ks = jax.random.split(key, 9)
    return {"sq": _init_linear(ks[0], e, d), "sk": _init_linear(ks[1], e, d),
            "sv": _init_linear(ks[2], e, d),
            "cq": _init_linear(ks[3], d, d), "ck": _init_linear(ks[4], d, d),
            "cv": _init_linear(ks[5], d, d),
            "mask_mha": _init_mha(ks[6], d, nh),
            "cross_mha": _init_mha(ks[7], d, nh),
            "ff": _init_ff(ks[8], d),
            "ln1": _init_layernorm(d), "ln2": _init_layernorm(d),
            "ln3": _init_layernorm(d)}


def init_transformer(key, cfg):
    ke, kd = jax.random.split(key)
    ke_emb, *ke_blocks = jax.random.split(ke, cfg["n_layer"] + 1)
    kd_emb, kd_out, *kd_blocks = jax.random.split(kd, cfg["n_layer"] + 2)
    v, e, d = cfg["vocab_size"], cfg["embedding_dim"], cfg["d_model"]
    encoder = {"emb": jax.random.normal(ke_emb, (v, e), jnp.float32),
               "blocks": [_init_encoder_block(k, cfg) for k in ke_blocks]}
    decoder = {"emb": jax.random.normal(kd_emb, (v, e), jnp.float32),
               "blocks": [_init_decoder_block(k, cfg) for k in kd_blocks],
               "out": _init_linear(kd_out, d, v)}
    return {"encoder": encoder, "decoder": decoder}


def _split_heads(x, num_heads):
    B, S, D = x.shape
    hd = D // num_heads
    return x.reshape(B, S, num_heads, hd).transpose(0, 2, 1, 3).reshape(B * num_heads, S, hd)


def _merge_heads(x, batch, num_heads):
    BH, S, hd = x.shape
    return x.reshape(batch, num_heads, S, hd).transpose(0, 2, 1, 3).reshape(batch, S, num_heads * hd)


def _mha_forward(p, Q, K, V, *, d_model, num_heads, causal, ops):
    scale = 1.0 / math.sqrt(d_model)   # spec scales by sqrt(d_model), not head dim
    B = Q.shape[0]
    # packed per-head projections: 3 full-width linears instead of 3*H tiny ones
    q = ops["linear"](Q, p["wq"], p["bq"])
    k = ops["linear"](K, p["wk"], p["bk"])
    v = ops["linear"](V, p["wv"], p["bv"])
    attn = ops["attention"](_split_heads(q, num_heads), _split_heads(k, num_heads),
                            _split_heads(v, num_heads), scale=scale, causal=causal)
    cat = _merge_heads(attn, B, num_heads)   # == torch.cat of per-head outputs
    return ops["linear"](cat, p["proj"]["w"], p["proj"]["b"])


def _ff_forward(p, x, *, ops):
    return ops["ffn"](x, p["p1"]["w"], p["p1"]["b"], p["p2"]["w"], p["p2"]["b"])


def _encoder_block_forward(p, x, *, cfg, ops):
    d, nh = cfg["d_model"], cfg["num_heads"]
    k = ops["linear"](x, p["k_proj"]["w"], p["k_proj"]["b"])
    q = ops["linear"](x, p["q_proj"]["w"], p["q_proj"]["b"])
    v = ops["linear"](x, p["v_proj"]["w"], p["v_proj"]["b"])
    # spec passes (k, q, v) positionally into MultiHeadAttention — order preserved
    attn = _mha_forward(p["mha"], k, q, v, d_model=d, num_heads=nh, causal=False, ops=ops)
    # TODO(synk): dropout(p=0.1) treated as identity (eval-mode forward).
    res = ops["add_layernorm"](x, attn, p["ln"]["g"], p["ln"]["b"])
    ff = _ff_forward(p["ff"], res, ops=ops)
    return ops["add_layernorm"](res, ff, p["ln"]["g"], p["ln"]["b"])   # same LN reused per spec


def _decoder_block_forward(p, x, enc_out, *, cfg, ops):
    d, nh = cfg["d_model"], cfg["num_heads"]
    q = ops["linear"](x, p["sq"]["w"], p["sq"]["b"])
    k = ops["linear"](x, p["sk"]["w"], p["sk"]["b"])
    v = ops["linear"](x, p["sv"]["w"], p["sv"]["b"])
    m = _mha_forward(p["mask_mha"], q, k, v, d_model=d, num_heads=nh, causal=True, ops=ops)
    x = ops["add_layernorm"](x, m, p["ln1"]["g"], p["ln1"]["b"])
    q = ops["linear"](x, p["cq"]["w"], p["cq"]["b"])
    k = ops["linear"](enc_out, p["ck"]["w"], p["ck"]["b"])
    v = ops["linear"](enc_out, p["cv"]["w"], p["cv"]["b"])
    c = _mha_forward(p["cross_mha"], q, k, v, d_model=d, num_heads=nh, causal=False, ops=ops)
    x = ops["add_layernorm"](x, c, p["ln2"]["g"], p["ln2"]["b"])
    ff = _ff_forward(p["ff"], x, ops=ops)
    return ops["add_layernorm"](x, ff, p["ln3"]["g"], p["ln3"]["b"])


def encoder_forward(p, input_seq, *, cfg, ops):
    # TODO(synk): embedding gather stays in plain JAX (data-dependent gather).
    tok = p["emb"][input_seq]
    pe = get_positional_embedding(cfg["seq_length"], cfg["d_model"])
    x = (tok + pe) * math.sqrt(cfg["embedding_dim"])
    for bp in p["blocks"]:
        x = _encoder_block_forward(bp, x, cfg=cfg, ops=ops)
    return x


def decoder_forward(p, tgt_seq, enc_out, *, cfg, ops):
    tok = p["emb"][tgt_seq]
    pe = get_positional_embedding(cfg["seq_length"], cfg["d_model"])
    x = (tok + pe) * math.sqrt(cfg["embedding_dim"])
    for bp in p["blocks"]:
        x = _decoder_block_forward(bp, x, enc_out, cfg=cfg, ops=ops)
    logits = ops["linear"](x, p["out"]["w"], p["out"]["b"])
    # TODO(synk): final vocab softmax kept in plain JAX.
    return jax.nn.softmax(logits, axis=-1)


def transformer_forward(params, src_seq, tgt_seq, *, cfg, ops):
    enc_out = encoder_forward(params["encoder"], src_seq, cfg=cfg, ops=ops)
    return decoder_forward(params["decoder"], tgt_seq, enc_out, cfg=cfg, ops=ops)


if __name__ == "__main__":
    cfg = dict(seq_length=8, vocab_size=64, embedding_dim=32, d_model=32,
               n_layer=2, num_heads=4)
    batch = 2

    root = jax.random.PRNGKey(0)
    kp, ksrc, ktgt = jax.random.split(root, 3)
    params = init_transformer(kp, cfg)
    src_seq = jax.random.randint(ksrc, (batch, cfg["seq_length"]), 0, cfg["vocab_size"])
    tgt_seq = jax.random.randint(ktgt, (batch, cfg["seq_length"]), 0, cfg["vocab_size"])

    out = transformer_forward(params, src_seq, tgt_seq, cfg=cfg, ops=OPS_PALLAS)
    out = jax.block_until_ready(out)

    ref = transformer_forward(params, src_seq, tgt_seq, cfg=cfg, ops=OPS_REF)
    ref = jax.block_until_ready(ref)

    assert out.shape == (batch, cfg["seq_length"], cfg["vocab_size"])
    assert bool(jnp.all(jnp.isfinite(out)))
    max_diff = float(jnp.max(jnp.abs(out - ref)))
    # approx reciprocal in the softmax normalization introduces ~1e-4 rel error
    assert jnp.allclose(out, ref, atol=2e-3, rtol=2e-2), (
        f"mismatch vs reference, max abs diff {max_diff}")
    print("KERNEL_OK")
</pallas_src>

<mosaic_0001>
module attributes {stable_mosaic.version = 11 : i64} {
  func.func @_linear_kernel(%arg0: i32, %arg1: i32, %arg2: i32, %arg3: memref<16x128xf32, #tpu.memory_space<vmem>>, %arg4: memref<128x128xf32, #tpu.memory_space<vmem>>, %arg5: memref<1x128xf32, #tpu.memory_space<vmem>>, %arg6: memref<16x128xf32, #tpu.memory_space<vmem>>, %arg7: memref<16x128xf32, #tpu.memory_space<vmem>>) attributes {dimension_semantics = [#tpu.dimension_semantics<parallel>, #tpu.dimension_semantics<parallel>, #tpu.dimension_semantics<arbitrary>], iteration_bounds = array<i64: 1, 1, 1>, scalar_prefetch = 0 : i64, scratch_operands = 1 : i64, tpu.core_type = #tpu.core_type<tc>, window_params = [{transform_indices = @transform_0, window_bounds = array<i64: 16, 128>}, {transform_indices = @transform_1, window_bounds = array<i64: 128, 128>}, {transform_indices = @transform_2, window_bounds = array<i64: 1, 128>}, {transform_indices = @transform_3, window_bounds = array<i64: 16, 128>}]} {
    %c0_i32 = arith.constant 0 : i32
    %0 = arith.cmpi eq, %arg2, %c0_i32 : i32
    %1 = arith.extui %0 : i1 to i32
    %c0_i32_0 = arith.constant 0 : i32
    %2 = arith.cmpi ne, %1, %c0_i32_0 : i32
    scf.if %2 {
      %cst_10 = arith.constant 0.000000e+00 : f32
      %12 = vector.broadcast %cst_10 : f32 to vector<16x128xf32>
      %c0_11 = arith.constant 0 : index
      %c0_12 = arith.constant 0 : index
      %13 = vector.load %arg7[%c0_11, %c0_12] : memref<16x128xf32, #tpu.memory_space<vmem>>, vector<16x128xf32>
      tpu.vector_store %arg7[%c0_11, %c0_12], %12 {strides = array<i32>} : memref<16x128xf32, #tpu.memory_space<vmem>>, vector<16x128xf32>,
    } else {
    }
    %c0 = arith.constant 0 : index
    %c0_1 = arith.constant 0 : index
    %3 = vector.load %arg7[%c0, %c0_1] : memref<16x128xf32, #tpu.memory_space<vmem>>, vector<16x128xf32>
    %c0_2 = arith.constant 0 : index
    %c0_3 = arith.constant 0 : index
    %4 = vector.load %arg3[%c0_2, %c0_3] : memref<16x128xf32, #tpu.memory_space<vmem>>, vector<16x128xf32>
    %c0_4 = arith.constant 0 : index
    %c0_5 = arith.constant 0 : index
    %5 = vector.load %arg4[%c0_4, %c0_5] : memref<128x128xf32, #tpu.memory_space<vmem>>, vector<128x128xf32>
    %cst = arith.constant dense<0.000000e+00> : vector<16x128xf32>
    %6 = tpu.matmul %4, %5, %cst {dimension_numbers = #tpu.dot_dimension_numbers<[1], [0], [0], [1], [0, 0, 1, 1], [], []>} : vector<16x128xf32>, vector<128x128xf32>, vector<16x128xf32> -> vector<16x128xf32>
    %7 = arith.addf %3, %6 : vector<16x128xf32>
    %c0_6 = arith.constant 0 : index
    %c0_7 = arith.constant 0 : index
    %8 = vector.load %arg7[%c0_6, %c0_7] : memref<16x128xf32, #tpu.memory_space<vmem>>, vector<16x128xf32>
    tpu.vector_store %arg7[%c0_6, %c0_7], %7 {strides = array<i32>} : memref<16x128xf32, #tpu.memory_space<vmem>>, vector<16x128xf32>,
    %c0_i32_8 = arith.constant 0 : i32
    %9 = arith.cmpi eq, %arg2, %c0_i32_8 : i32
    %10 = arith.extui %9 : i1 to i32
    %c0_i32_9 = arith.constant 0 : i32
    %11 = arith.cmpi ne, %10, %c0_i32_9 : i32
    scf.if %11 {
      %c0_10 = arith.constant 0 : index
      %c0_11 = arith.constant 0 : index
      %12 = vector.load %arg7[%c0_10, %c0_11] : memref<16x128xf32, #tpu.memory_space<vmem>>, vector<16x128xf32>
      %c0_12 = arith.constant 0 : index
      %c0_13 = arith.constant 0 : index
      %13 = vector.load %arg5[%c0_12, %c0_13] : memref<1x128xf32, #tpu.memory_space<vmem>>, vector<1x128xf32>
      %14 = vector.broadcast %13 : vector<1x128xf32> to vector<16x128xf32>
      %15 = arith.addf %12, %14 : vector<16x128xf32>
      %c0_14 = arith.constant 0 : index
      %c0_15 = arith.constant 0 : index
      %16 = vector.load %arg6[%c0_14, %c0_15] : memref<16x128xf32, #tpu.memory_space<vmem>>, vector<16x128xf32>
      tpu.vector_store %arg6[%c0_14, %c0_15], %15 {strides = array<i32>} : memref<16x128xf32, #tpu.memory_space<vmem>>, vector<16x128xf32>,
    } else {
    }
    return
  }
  func.func @transform_0(%arg0: i32, %arg1: i32, %arg2: i32) -> (i32, i32) {
    %c0_i32 = arith.constant 0 : i32
    return %arg0, %arg2 : i32, i32
  }
  func.func @transform_1(%arg0: i32, %arg1: i32, %arg2: i32) -> (i32, i32) {
    %c0_i32 = arith.constant 0 : i32
    return %arg2, %arg1 : i32, i32
  }
  func.func @transform_2(%arg0: i32, %arg1: i32, %arg2: i32) -> (i32, i32) {
    %c0_i32 = arith.constant 0 : i32
    %c0_i32_0 = arith.constant 0 : i32
    return %c0_i32, %arg1 : i32, i32
  }
  func.func @transform_3(%arg0: i32, %arg1: i32, %arg2: i32) -> (i32, i32) {
    %c0_i32 = arith.constant 0 : i32
    return %arg0, %arg1 : i32, i32
  }
}

</mosaic_0001>

<bundles_post_ra>
// kernel: tpu_custom_call.1
= control target key start
LH: loop header
LB: loop body
LE: loop exit
PB: predicated region body
PF: predicated region fallthrough
CT: control target
= control target key end

     0   :  { %8 = vsyncpa [#allocation4], 0  ;;  %s418_s0 = inlined_call_operand.hbm [shape: f32[16,128], index: 0, kind: input, shape index: {}]   ;;  %s419_s1 = inlined_call_operand.hbm [shape: f32[128,128], index: 1, kind: input, shape index: {}]   ;;  %s420_s2 = inlined_call_operand.vmem [shape: f32[1,128], index: 2, kind: input, shape index: {}]   ;;  %s421_s3 = inlined_call_operand.hbm [shape: f32[16,128], index: 3, kind: output, shape index: {}]  }
   0x1   :  { %9 = vsyncpa [#allocation7], 0 }
   0x2   :  { %10 = vsyncpa [#allocation5], 0  ;;  %s345_s12 = smov [#allocation3]   ;;  %s273_s16 = scalar_lea.hbm %s418_s0, 256 }
   0x3   :  { %s16_s13 = sshll.u32 %s345_s12, 4  ;;  %p274_p0 = scmp.ne.s32.totalorder %s418_s0, %s273_s16  ;;  %s17_s13 = int_to_ptr.vmem [resolvable:$true] %s16_s13 }
   0x4   :  { %p277_p1 = scmp.lt.u32.totalorder %s273_s16, %s418_s0 }
   0x6   :  { %p279_p2 = pnand %p277_p1, %p274_p0 }
   0x8   :  { %282 = shalt.err (!%p279_p2)
}
   0x9   :  { %s283_s21 = scalar_lea.vmem %s17_s13, 256  ;;  %p288_p4 = scmp.lt.s32.totalorder %s17_s13, %s17_s13 }
   0xa   :  { %p284_p3 = scmp.ne.s32.totalorder %s17_s13, %s283_s21  ;;  %p289_p5 = scmp.lt.s32.totalorder %s283_s21, %s283_s21 }
   0xc   :  { %p290_p6 = por %p289_p5, %p288_p4 }
   0xe   :  { %p291_p7 = pnand %p290_p6, %p284_p3 }
  0x10   :  { %294 = shalt.err (!%p291_p7)
}
  0x11   :  { %s346_s22 = smov 128   ;;  %s347_s23 = smov 8  }
  0x12   :  { %22 = dma.hbm_to_vmem [thread:$0]  %s418_s0, 256, %s17_s13, [#allocation4], %s346_s22, %s346_s22, %s347_s23  }
  0x13   :  { %s348_s26 = smov [#allocation6]   ;;  %s295_s30 = scalar_lea.hbm %s419_s1, 2048 }
  0x14   :  { %s28_s27 = sshll.u32 %s348_s26, 4  ;;  %p296_p8 = scmp.ne.s32.totalorder %s419_s1, %s295_s30  ;;  %s29_s27 = int_to_ptr.vmem [resolvable:$true] %s28_s27 }
  0x15   :  { %p299_p9 = scmp.lt.u32.totalorder %s295_s30, %s419_s1 }
  0x17   :  { %p301_p10 = pnand %p299_p9, %p296_p8 }
  0x19   :  { %304 = shalt.err (!%p301_p10)
}
  0x1a   :  { %s305_s8 = scalar_lea.vmem %s29_s27, 2048  ;;  %p310_p12 = scmp.lt.s32.totalorder %s29_s27, %s29_s27 }
  0x1b   :  { %p306_p11 = scmp.ne.s32.totalorder %s29_s27, %s305_s8  ;;  %p311_p13 = scmp.lt.s32.totalorder %s305_s8, %s305_s8 }
  0x1d   :  { %p312_p0 = por %p311_p13, %p310_p12 }
  0x1f   :  { %p313_p1 = pnand %p312_p0, %p306_p11 }
  0x21   :  { %316 = shalt.err (!%p313_p1)
}
  0x22   :  { %34 = dma.hbm_to_vmem [thread:$0]  %s419_s1, 2048, %s29_s27, [#allocation7], %s346_s22, %s346_s22, %s347_s23  }
  0x23   :  { %339 = dma.done.wait [#allocation4], 256  }
  0x24   :  { %340 = vsyncadd [#allocation4], 4294967040 }
  0x25   :  { %341 = dma.done.wait [#allocation7], 2048  }
  0x26   :  { %342 = vsyncadd [#allocation7], 4294965248  ;;  %v53_v0 = vld [vmem:[#allocation6] sm:$0xff]  ;;  %v54_v1 = vld [vmem:[#allocation6 + $0x8] sm:$0xff]  ;;  %s349_s11 = smov [#allocation8]  }
  0x27   :  { %v55_v2 = vld [vmem:[#allocation6 + $0x10] sm:$0xff]  ;;  %v236_v3 = vpack.c.bf16 %v54_v1, %v53_v0  ;;  %v56_v4 = vld [vmem:[#allocation6 + $0x18] sm:$0xff]  ;;  %v57_v6 = vld [vmem:[#allocation6 + $0x20] sm:$0xff]  ;;  %s169_s12 = sshll.u32 %s349_s11, 4  ;;  %s170_s12 = int_to_ptr.vmem [resolvable:$true] %s169_s12 }
  0x28   :  { %v240_v5 = vpack.c.bf16 %v56_v4, %v55_v2  ;;  %v58_v7 = vld [vmem:[#allocation6 + $0x28] sm:$0xff]  ;;  %v51_v9 = vld [vmem:[#allocation3] sm:$0xff]  ;;  %v60_v11 = vld [vmem:[#allocation6 + $0x38] sm:$0xff]  ;;  %s317_s13 = scalar_lea.vmem %s170_s12, 256  ;;  %p322_p3 = scmp.lt.s32.totalorder %s170_s12, %s170_s12 }
  0x29   :  { %237 = vmatprep.subr.bf16.mxu0 %v236_v3  ;;  %v244_v8 = vpack.c.bf16 %v58_v7, %v57_v6  ;;  %v59_v10 = vld [vmem:[#allocation6 + $0x30] sm:$0xff]  ;;  %233 = vmatprep.mubr.f32.mxu0 %v51_v9  ;;  %v61_v13 = vld [vmem:[#allocation6 + $0x40] sm:$0xff]  ;;  %v62_v14 = vld [vmem:[#allocation6 + $0x48] sm:$0xff]  ;;  %p318_p2 = scmp.ne.s32.totalorder %s170_s12, %s317_s13  ;;  %p323_p4 = scmp.lt.s32.totalorder %s317_s13, %s317_s13 }
  0x2a   :  { %239 = vmatpush3.bf16.msra.mxu0 %v236_v3  ;;  %v248_v12 = vpack.c.bf16 %v60_v11, %v59_v10  ;;  %v252_v15 = vpack.c.bf16 %v62_v14, %v61_v13  ;;  %v63_v16 = vld [vmem:[#allocation6 + $0x50] sm:$0xff]  ;;  %v64_v17 = vld [vmem:[#allocation6 + $0x58] sm:$0xff]  ;;  %v65_v19 = vld [vmem:[#allocation6 + $0x60] sm:$0xff] }
  0x2b   :  { %241 = vmatprep.subr.bf16.mxu0 %v240_v5  ;;  %v256_v18 = vpack.c.bf16 %v64_v17, %v63_v16  ;;  %v66_v20 = vld [vmem:[#allocation6 + $0x68] sm:$0xff]  ;;  %v67_v22 = vld [vmem:[#allocation6 + $0x70] sm:$0xff]  ;;  %v68_v23 = vld [vmem:[#allocation6 + $0x78] sm:$0xff]  ;;  %p324_p5 = por %p323_p4, %p322_p3 }
  0x2c   :  { %v260_v21 = vpack.c.bf16 %v66_v20, %v65_v19  ;;  %v264_v24 = vpack.c.bf16 %v68_v23, %v67_v22  ;;  %v52_v25 = vld [vmem:[#allocation3 + $0x8] sm:$0xff]  ;;  %v182_v26 = vld [vmem:[%s420_s2] ss:$0 sm:$0xff] }
  0x2d   :  { %p325_p6 = pnand %p324_p5, %p318_p2 }
  0x2e   :  { %243 = vmatpush3.bf16.msra.mxu0 %v240_v5 }
  0x2f   :  { %245 = vmatprep.subr.bf16.mxu0 %v244_v8 }
  0x32   :  { %247 = vmatpush3.bf16.msra.mxu0 %v244_v8 }
  0x33   :  { %249 = vmatprep.subr.bf16.mxu0 %v248_v12 }
  0x36   :  { %251 = vmatpush3.bf16.msra.mxu0 %v248_v12 }
  0x37   :  { %253 = vmatprep.subr.bf16.mxu0 %v252_v15 }
  0x3a   :  { %255 = vmatpush3.bf16.msra.mxu0 %v252_v15 }
  0x3b   :  { %257 = vmatprep.subr.bf16.mxu0 %v256_v18 }
  0x3e   :  { %259 = vmatpush3.bf16.msra.mxu0 %v256_v18 }
  0x3f   :  { %261 = vmatprep.subr.bf16.mxu0 %v260_v21 }
  0x42   :  { %263 = vmatpush3.bf16.msra.mxu0 %v260_v21 }
  0x43   :  { %265 = vmatprep.subr.bf16.mxu0 %v264_v24 }
  0x46   :  { %267 = vmatpush3.bf16.msra.mxu0 %v264_v24 }
  0x49   :  { %234 = vmatmul.mubr.f32.vlgmr.msra.gmra.mrb[0].mxu0 %v52_v25 }
 0x11c   :  { %v235_v27 = vpop.f32.mrb[0].mxu0 }
 0x11d   :  { %v161_v28 = vadd.f32 %v235_v27, %v182_v26  ;;  %v135_v29 = vpop.f32.mrb[1].mxu0 }
 0x11e   :  { %v160_v30 = vadd.f32 %v182_v26, %v135_v29 }
 0x11f   :  { %163 = vst [vmem:[#allocation8 + $0x8] sm:$0xff] %v161_v28 }
 0x120   :  { %162 = vst [vmem:[#allocation8] sm:$0xff] %v160_v30 }
 0x121   :  { %328 = shalt.err (!%p325_p6)
}
 0x122   :  { %s329_s2 = scalar_lea.hbm %s421_s3, 256 }
 0x123   :  { %p330_p7 = scmp.ne.s32.totalorder %s421_s3, %s329_s2  ;;  %p333_p8 = scmp.lt.u32.totalorder %s329_s2, %s421_s3 }
 0x125   :  { %p335_p9 = pnand %p333_p8, %p330_p7 }
 0x127   :  { %338 = shalt.err (!%p335_p9)
}
 0x128   :  { %175 = dma.vmem_to_hbm [thread:$0]  %s170_s12, 256, %s421_s3, [#allocation5], %s346_s22, %s346_s22, %s347_s23  }
 0x129   :  { %343 = dma.done.wait [#allocation5], 256  }
 0x12a   :  { %344 = vsyncadd [#allocation5], 4294967040 }
 0x12b   :  { %179 = vsyncpa [#allocation4], 1 }
 0x12c   :  { %180 = vsyncpa [#allocation7], 1 }
 0x12d   :  { %181 = vsyncpa [#allocation5], 1 }

</bundles_post_ra>
